<compile_context>
chip_gen: v7x
topology: tpu7x:2x2x1
jax: 0.10.0
libtpu: 0.0.40
codegen_flags: <defaults>
</compile_context>

<pallas_src>
import functools

import jax
import jax.numpy as jnp
import numpy as np
from jax import lax
from jax.experimental import pallas as pl
from jax.experimental.pallas import tpu as pltpu

NUM_CLASSES = 4
TEMPERATURE = 0.5
EPS = 1e-8  # torch CosineSimilarity eps


def _pick_tile(n, cap, align):
    """Largest `align`-aligned tile <= cap that divides n, else full extent."""
    # TODO(synk): for awkward N with no aligned divisor, pad N (or mask a
    # partial last block) instead of falling back to one huge block.
    if n <= cap:
        return n
    for t in range(cap, align - 1, -1):
        if n % t == 0 and t % align == 0:
            return t
    return n


# ---------------------------------------------------------------------------
# Prologue: row-tiled normalization + row-invariant terms.
# ---------------------------------------------------------------------------
def _prep_kernel(inv_t, embed_ref, proxy_ref, ehat_ref, e2p_ref, diag_ref):
    e = embed_ref[...].astype(jnp.float32)              # (TMp, D)
    p = proxy_ref[...].astype(jnp.float32)              # (TMp, D)

    # max(||x||, eps) == sqrt(max(||x||^2, eps^2)); rsqrt runs on the EUP.
    e_ss = jnp.sum(e * e, axis=-1, keepdims=True)
    p_ss = jnp.sum(p * p, axis=-1, keepdims=True)
    e_hat = e * lax.rsqrt(jnp.maximum(e_ss, EPS * EPS))
    p_hat = p * lax.rsqrt(jnp.maximum(p_ss, EPS * EPS))

    # bf16 copy feeds the MXU matmul (half the HBM bytes, native MXU rate).
    e_hat_bf = e_hat.astype(jnp.bfloat16)
    ehat_ref[...] = e_hat_bf

    # embed-to-own-proxy term (kept in f32, independent of the matmul path).
    e2p_ref[...] = jnp.exp(jnp.sum(e_hat * p_hat, axis=-1, keepdims=True) * inv_t)

    # sim-matrix diagonal, computed from the bf16-rounded e_hat so that the
    # later diagonal subtraction cancels the bf16 MXU matmul's diagonal.
    e_rt = e_hat_bf.astype(jnp.float32)
    diag_ref[...] = jnp.exp(jnp.sum(e_rt * e_rt, axis=-1, keepdims=True) * inv_t)


# ---------------------------------------------------------------------------
# Main kernel: flash-style tile over the (N, N) similarity matrix.
# ---------------------------------------------------------------------------
def _loss_tile_kernel(inv_t, tn, lanes, slice_cols,
                      e_row_ref, e_col_ref, lab_i_ref, lab_j_ref,
                      e2p_ref, diag_ref, out_ref, pos_acc, all_acc):
    j = pl.program_id(1)

    @pl.when(j == 0)
    def _():
        pos_acc[...] = jnp.zeros_like(pos_acc)
        all_acc[...] = jnp.zeros_like(all_acc)

    if slice_cols:
        # Column panel is VMEM-resident (full (N, D) block, constant index
        # map); slice the (TN, D) window for this reduction step.
        col_start = pl.multiple_of(j * tn, tn)
        e_col = e_col_ref[pl.ds(col_start, tn), :]       # (TN, D) bf16
    else:
        e_col = e_col_ref[...]                           # (TN, D) bf16

    # (TM, D) x (TN, D)^T on the MXU, bf16 operands, f32 accumulation.
    # No explicit transpose anywhere (flash-attention style q.k^T).
    sim = lax.dot_general(e_row_ref[...], e_col,
                          dimension_numbers=(((1,), (1,)), ((), ())),
                          preferred_element_type=jnp.float32)
    exp_sim = jnp.exp(sim * inv_t)                       # (TM, TN) f32

    # Same-label positives (the diagonal is always same-label and is removed
    # later by subtracting diag_e, so no off-diagonal iota mask is needed).
    same = lab_i_ref[...] == lab_j_ref[...]              # (TM,1)==(1,TN) -> (TM,TN)
    pos = jnp.where(same, exp_sim, 0.0)

    # Lane-dense accumulation: fold TN into `lanes`-wide chunks with plain VPU
    # adds; the cross-lane XLU reduce happens once, at the last column step.
    a_part = exp_sim[:, 0:lanes]
    p_part = pos[:, 0:lanes]
    for c in range(1, tn // lanes):
        a_part = a_part + exp_sim[:, c * lanes:(c + 1) * lanes]
        p_part = p_part + pos[:, c * lanes:(c + 1) * lanes]
    all_acc[...] += a_part
    pos_acc[...] += p_part

    @pl.when(j == pl.num_programs(1) - 1)
    def _():
        e2p = e2p_ref[...]
        diag = diag_ref[...]
        pos_sum = jnp.sum(pos_acc[...], axis=-1, keepdims=True) - diag
        all_sum = jnp.sum(all_acc[...], axis=-1, keepdims=True) - diag
        out_ref[...] = jnp.log((e2p + pos_sum) / (e2p + all_sum))


def conditional_contrastive_loss(embed, proxy, label, *,
                                 temperature=TEMPERATURE,
                                 block_m=256, block_n=1024,
                                 prologue_block_m=512,
                                 resident_col_bytes=16 * 1024 * 1024):
    """embed, proxy: (N, D) float32; label: (N,) int32. Returns scalar loss."""
    n, d = embed.shape
    inv_t = float(1.0 / temperature)

    # ---- Prologue (row-tiled): normalize + row-invariant (N,1) terms. ----
    tmp = _pick_tile(n, prologue_block_m, 16)   # 16: bf16 sublane packing
    e_hat, e2p, diag_e = pl.pallas_call(
        functools.partial(_prep_kernel, inv_t),
        out_shape=(jax.ShapeDtypeStruct((n, d), jnp.bfloat16),
                   jax.ShapeDtypeStruct((n, 1), jnp.float32),
                   jax.ShapeDtypeStruct((n, 1), jnp.float32)),
        grid_spec=pl.GridSpec(
            grid=(n // tmp,),
            in_specs=[pl.BlockSpec((tmp, d), lambda i: (i, 0)),
                      pl.BlockSpec((tmp, d), lambda i: (i, 0))],
            out_specs=[pl.BlockSpec((tmp, d), lambda i: (i, 0)),
                       pl.BlockSpec((tmp, 1), lambda i: (i, 0)),
                       pl.BlockSpec((tmp, 1), lambda i: (i, 0))],
        ),
        compiler_params=pltpu.CompilerParams(
            dimension_semantics=("parallel",),
            vmem_limit_bytes=32 * 1024 * 1024),
    )(embed.astype(jnp.float32), proxy.astype(jnp.float32))

    lab_i = label.reshape(n, 1).astype(jnp.int32)
    lab_j = label.reshape(1, n).astype(jnp.int32)

    tm = _pick_tile(n, block_m, 16)     # bf16 row panel: 16-sublane aligned
    tn = _pick_tile(n, block_n, 128)    # lane-aligned column tile
    lanes = 128 if tn % 128 == 0 else tn

    # Keep the whole bf16 column panel resident in VMEM when it fits the
    # budget (chosen with v7x's 64 MiB in mind), so it is DMA'd from HBM once
    # instead of once per row block.
    resident = (2 * n * d * 2) <= resident_col_bytes     # x2 buffering budget
    slice_cols = resident and (tn < n)
    if resident:
        col_spec = pl.BlockSpec((n, d), lambda i, j: (0, 0))
    else:
        col_spec = pl.BlockSpec((tn, d), lambda i, j: (j, 0))

    # Explicit VMEM budget (important on v7x: 64 MiB physical, 32 MiB scoped).
    est = (2 * tm * d * 2                                         # row panel
           + ((2 * n * d * 2) if resident else (2 * tn * d * 2))  # col panel
           + 2 * 3 * tm * 4 + 2 * tn * 4 + 2 * tm * 4             # small blocks
           + 2 * tm * lanes * 4                                   # accumulators
           + 2 * tm * tn * 4)                                     # working tiles
    vmem_limit = min(max(int(est * 1.5) + (4 << 20), 32 << 20), 48 << 20)

    col_stream = n * d * 2 if resident else (n // tm) * n * d * 2
    cost = pl.CostEstimate(flops=2 * n * n * d,
                           transcendentals=n * n,
                           bytes_accessed=n * d * 2 + col_stream + 5 * n * 4)

    # ---- Main tiled kernel over the (N, N) similarity matrix. ----
    log_ratio = pl.pallas_call(
        functools.partial(_loss_tile_kernel, inv_t, tn, lanes, slice_cols),
        out_shape=jax.ShapeDtypeStruct((n, 1), jnp.float32),
        grid_spec=pltpu.PrefetchScalarGridSpec(
            num_scalar_prefetch=0,
            grid=(n // tm, n // tn),
            in_specs=[
                pl.BlockSpec((tm, d), lambda i, j: (i, 0)),   # e_hat rows (bf16)
                col_spec,                                     # e_hat cols (bf16)
                pl.BlockSpec((tm, 1), lambda i, j: (i, 0)),   # labels (rows)
                pl.BlockSpec((1, tn), lambda i, j: (0, j)),   # labels (cols)
                pl.BlockSpec((tm, 1), lambda i, j: (i, 0)),   # e2p
                pl.BlockSpec((tm, 1), lambda i, j: (i, 0)),   # diag_e
            ],
            out_specs=pl.BlockSpec((tm, 1), lambda i, j: (i, 0)),
            scratch_shapes=[pltpu.VMEM((tm, lanes), jnp.float32),   # pos partial
                            pltpu.VMEM((tm, lanes), jnp.float32)],  # all partial
        ),
        compiler_params=pltpu.CompilerParams(
            dimension_semantics=("parallel", "arbitrary"),
            vmem_limit_bytes=vmem_limit),
        cost_estimate=cost,
    )(e_hat, e_hat, lab_i, lab_j, e2p, diag_e)

    # Single final mean over N (divides by N exactly once).
    return -jnp.mean(log_ratio)


def _reference_loss(embed, proxy, label, temperature=TEMPERATURE):
    """Pure-JAX f32 reference mirroring the PyTorch forward."""
    e = embed / jnp.maximum(jnp.linalg.norm(embed, axis=-1, keepdims=True), EPS)
    p = proxy / jnp.maximum(jnp.linalg.norm(proxy, axis=-1, keepdims=True), EPS)
    sim = e @ e.T
    exp_sim = jnp.exp(sim / temperature)
    n = embed.shape[0]
    off_diag = ~jnp.eye(n, dtype=bool)
    same = label[:, None] == label[None, :]
    e2p = jnp.exp(jnp.sum(e * p, axis=-1) / temperature)
    pos_sum = jnp.sum(jnp.where(off_diag & same, exp_sim, 0.0), axis=-1)
    all_sum = jnp.sum(jnp.where(off_diag, exp_sim, 0.0), axis=-1)
    return -jnp.mean(jnp.log((e2p + pos_sum) / (e2p + all_sum)))


if __name__ == "__main__":
    # bf16 MXU operands vs the f32 reference -> use a bf16-appropriate tol.
    RTOL = ATOL = 2e-3

    key = jax.random.PRNGKey(0)
    k1, k2, k3 = jax.random.split(key, 3)

    # Small shapes consistent with the module: batch of 8 embeddings, dim 32.
    N, D = 8, 32
    embed = jax.random.normal(k1, (N, D), dtype=jnp.float32)
    proxy = jax.random.normal(k2, (N, D), dtype=jnp.float32)
    label = jax.random.randint(k3, (N,), 0, NUM_CLASSES, dtype=jnp.int32)

    loss = jax.block_until_ready(conditional_contrastive_loss(embed, proxy, label))
    ref = jax.block_until_ready(_reference_loss(embed, proxy, label))
    np.testing.assert_allclose(np.asarray(loss), np.asarray(ref),
                               rtol=RTOL, atol=ATOL)

    # Larger case exercising the tiled 2x2 grid with a resident column panel.
    k4, k5, k6 = jax.random.split(jax.random.PRNGKey(1), 3)
    N2, D2 = 256, 64
    embed2 = jax.random.normal(k4, (N2, D2), dtype=jnp.float32)
    proxy2 = jax.random.normal(k5, (N2, D2), dtype=jnp.float32)
    label2 = jax.random.randint(k6, (N2,), 0, NUM_CLASSES, dtype=jnp.int32)
    ref2 = jax.block_until_ready(_reference_loss(embed2, proxy2, label2))

    loss2 = jax.block_until_ready(
        conditional_contrastive_loss(embed2, proxy2, label2,
                                     block_m=128, block_n=128))
    np.testing.assert_allclose(np.asarray(loss2), np.asarray(ref2),
                               rtol=RTOL, atol=ATOL)

    # Same case but forcing the streamed (non-resident) column-panel path.
    loss3 = jax.block_until_ready(
        conditional_contrastive_loss(embed2, proxy2, label2,
                                     block_m=128, block_n=128,
                                     resident_col_bytes=0))
    np.testing.assert_allclose(np.asarray(loss3), np.asarray(ref2),
                               rtol=RTOL, atol=ATOL)

    print("KERNEL_OK")
</pallas_src>

<mosaic_0001>
module attributes {stable_mosaic.version = 11 : i64} {
  func.func @_prep_kernel(%arg0: i32, %arg1: memref<8x32xf32, #tpu.memory_space<vmem>>, %arg2: memref<8x32xf32, #tpu.memory_space<vmem>>, %arg3: memref<8x32xbf16, #tpu.memory_space<vmem>>, %arg4: memref<8x1xf32, #tpu.memory_space<vmem>>, %arg5: memref<8x1xf32, #tpu.memory_space<vmem>>) attributes {dimension_semantics = [#tpu.dimension_semantics<parallel>], iteration_bounds = array<i64: 1>, scalar_prefetch = 0 : i64, scratch_operands = 0 : i64, tpu.core_type = #tpu.core_type<tc>, window_params = [{transform_indices = @transform_0, window_bounds = array<i64: 8, 32>}, {transform_indices = @transform_1, window_bounds = array<i64: 8, 32>}, {transform_indices = @transform_2, window_bounds = array<i64: 8, 32>}, {transform_indices = @transform_3, window_bounds = array<i64: 8, 1>}, {transform_indices = @transform_4, window_bounds = array<i64: 8, 1>}]} {
    %c0 = arith.constant 0 : index
    %c0_0 = arith.constant 0 : index
    %0 = vector.load %arg1[%c0, %c0_0] : memref<8x32xf32, #tpu.memory_space<vmem>>, vector<8x32xf32>
    %c0_1 = arith.constant 0 : index
    %c0_2 = arith.constant 0 : index
    %1 = vector.load %arg2[%c0_1, %c0_2] : memref<8x32xf32, #tpu.memory_space<vmem>>, vector<8x32xf32>
    %2 = arith.mulf %0, %0 : vector<8x32xf32>
    %cst = arith.constant dense<0.000000e+00> : vector<8xf32>
    %3 = vector.multi_reduction <add>, %2, %cst [1] : vector<8x32xf32> to vector<8xf32>
    %4 = vector.shape_cast %3 : vector<8xf32> to vector<8x1xf32>
    %5 = arith.mulf %1, %1 : vector<8x32xf32>
    %cst_3 = arith.constant dense<0.000000e+00> : vector<8xf32>
    %6 = vector.multi_reduction <add>, %5, %cst_3 [1] : vector<8x32xf32> to vector<8xf32>
    %7 = vector.shape_cast %6 : vector<8xf32> to vector<8x1xf32>
    %cst_4 = arith.constant 1.000000e-16 : f32
    %8 = vector.broadcast %cst_4 : f32 to vector<8x1xf32>
    %9 = arith.maximumf %4, %8 : vector<8x1xf32>
    %10 = math.rsqrt %9 : vector<8x1xf32>
    %11 = vector.broadcast %10 : vector<8x1xf32> to vector<8x32xf32>
    %12 = arith.mulf %0, %11 : vector<8x32xf32>
    %cst_5 = arith.constant 1.000000e-16 : f32
    %13 = vector.broadcast %cst_5 : f32 to vector<8x1xf32>
    %14 = arith.maximumf %7, %13 : vector<8x1xf32>
    %15 = math.rsqrt %14 : vector<8x1xf32>
    %16 = vector.broadcast %15 : vector<8x1xf32> to vector<8x32xf32>
    %17 = arith.mulf %1, %16 : vector<8x32xf32>
    %18 = arith.truncf %12 : vector<8x32xf32> to vector<8x32xbf16>
    %c0_6 = arith.constant 0 : index
    %c0_7 = arith.constant 0 : index
    %19 = vector.load %arg3[%c0_6, %c0_7] : memref<8x32xbf16, #tpu.memory_space<vmem>>, vector<8x32xbf16>
    tpu.vector_store %arg3[%c0_6, %c0_7], %18 {strides = array<i32>} : memref<8x32xbf16, #tpu.memory_space<vmem>>, vector<8x32xbf16>,
    %20 = arith.mulf %12, %17 : vector<8x32xf32>
    %cst_8 = arith.constant dense<0.000000e+00> : vector<8xf32>
    %21 = vector.multi_reduction <add>, %20, %cst_8 [1] : vector<8x32xf32> to vector<8xf32>
    %22 = vector.shape_cast %21 : vector<8xf32> to vector<8x1xf32>
    %cst_9 = arith.constant 2.000000e+00 : f32
    %23 = vector.broadcast %cst_9 : f32 to vector<8x1xf32>
    %24 = arith.mulf %22, %23 : vector<8x1xf32>
    %25 = math.exp %24 : vector<8x1xf32>
    %c0_10 = arith.constant 0 : index
    %c0_11 = arith.constant 0 : index
    %26 = vector.load %arg4[%c0_10, %c0_11] : memref<8x1xf32, #tpu.memory_space<vmem>>, vector<8x1xf32>
    tpu.vector_store %arg4[%c0_10, %c0_11], %25 {strides = array<i32>} : memref<8x1xf32, #tpu.memory_space<vmem>>, vector<8x1xf32>,
    %27 = arith.extf %18 : vector<8x32xbf16> to vector<8x32xf32>
    %28 = arith.mulf %27, %27 : vector<8x32xf32>
    %cst_12 = arith.constant dense<0.000000e+00> : vector<8xf32>
    %29 = vector.multi_reduction <add>, %28, %cst_12 [1] : vector<8x32xf32> to vector<8xf32>
    %30 = vector.shape_cast %29 : vector<8xf32> to vector<8x1xf32>
    %cst_13 = arith.constant 2.000000e+00 : f32
    %31 = vector.broadcast %cst_13 : f32 to vector<8x1xf32>
    %32 = arith.mulf %30, %31 : vector<8x1xf32>
    %33 = math.exp %32 : vector<8x1xf32>
    %c0_14 = arith.constant 0 : index
    %c0_15 = arith.constant 0 : index
    %34 = vector.load %arg5[%c0_14, %c0_15] : memref<8x1xf32, #tpu.memory_space<vmem>>, vector<8x1xf32>
    tpu.vector_store %arg5[%c0_14, %c0_15], %33 {strides = array<i32>} : memref<8x1xf32, #tpu.memory_space<vmem>>, vector<8x1xf32>,
    return
  }
  func.func @transform_0(%arg0: i32) -> (i32, i32) {
    %c0_i32 = arith.constant 0 : i32
    %c0_i32_0 = arith.constant 0 : i32
    return %arg0, %c0_i32 : i32, i32
  }
  func.func @transform_1(%arg0: i32) -> (i32, i32) {
    %c0_i32 = arith.constant 0 : i32
    %c0_i32_0 = arith.constant 0 : i32
    return %arg0, %c0_i32 : i32, i32
  }
  func.func @transform_2(%arg0: i32) -> (i32, i32) {
    %c0_i32 = arith.constant 0 : i32
    %c0_i32_0 = arith.constant 0 : i32
    return %arg0, %c0_i32 : i32, i32
  }
  func.func @transform_3(%arg0: i32) -> (i32, i32) {
    %c0_i32 = arith.constant 0 : i32
    %c0_i32_0 = arith.constant 0 : i32
    return %arg0, %c0_i32 : i32, i32
  }
  func.func @transform_4(%arg0: i32) -> (i32, i32) {
    %c0_i32 = arith.constant 0 : i32
    %c0_i32_0 = arith.constant 0 : i32
    return %arg0, %c0_i32 : i32, i32
  }
}

</mosaic_0001>

<bundles_post_ra>
// kernel: tpu_custom_call.1
= control target key start
LH: loop header
LB: loop body
LE: loop exit
PB: predicated region body
PF: predicated region fallthrough
CT: control target
= control target key end

     0   :  { %10 = vsyncpa [#allocation3], 0  ;;  %s258_s0 = inlined_call_operand.hbm [shape: f32[8,32], index: 0, kind: input, shape index: {}]   ;;  %s259_s1 = inlined_call_operand.hbm [shape: f32[8,32], index: 1, kind: input, shape index: {}]   ;;  %s260_s2 = inlined_call_operand.hbm [shape: bf16[8,32], index: 2, kind: output, shape index: {0}]   ;;  %s261_s3 = inlined_call_operand.vmem [shape: f32[8,1], index: 3, kind: output, shape index: {1}]   ;;  %s262_s4 = inlined_call_operand.vmem [shape: f32[8,1], index: 4, kind: output, shape index: {2}]  }
   0x1   :  { %11 = vsyncpa [#allocation6], 0 }
   0x2   :  { %12 = vsyncpa [#allocation4], 0  ;;  %s184_s15 = smov [#allocation2]   ;;  %s185_s17 = smov [#allocation5]  }
   0x3   :  { %s19_s16 = sshll.u32 %s184_s15, 4  ;;  %s29_s18 = sshll.u32 %s185_s17, 4  ;;  %s20_s16 = int_to_ptr.vmem [resolvable:$true] %s19_s16  ;;  %s30_s18 = int_to_ptr.vmem [resolvable:$true] %s29_s18 }
   0x4   :  { %s112_s21 = scalar_lea.hbm %s258_s0, 128 }
   0x5   :  { %p113_p0 = scmp.ne.s32.totalorder %s258_s0, %s112_s21  ;;  %p116_p1 = scmp.lt.u32.totalorder %s112_s21, %s258_s0 }
   0x7   :  { %p118_p2 = pnand %p116_p1, %p113_p0 }
   0x9   :  { %121 = shalt.err (!%p118_p2)
}
   0xa   :  { %s122_s26 = scalar_lea.vmem %s20_s16, 128  ;;  %p127_p4 = scmp.lt.s32.totalorder %s20_s16, %s20_s16 }
   0xb   :  { %p123_p3 = scmp.ne.s32.totalorder %s20_s16, %s122_s26  ;;  %p128_p5 = scmp.lt.s32.totalorder %s122_s26, %s122_s26 }
   0xd   :  { %p129_p6 = por %p128_p5, %p127_p4 }
   0xf   :  { %p130_p7 = pnand %p129_p6, %p123_p3 }
  0x11   :  { %133 = shalt.err (!%p130_p7)
}
  0x12   :  { %22 = dma.hbm_to_vmem [thread:$0]  %s258_s0, 128, %s20_s16, [#allocation3]  }
  0x13   :  { %s134_s5 = scalar_lea.hbm %s259_s1, 128 }
  0x14   :  { %p135_p8 = scmp.ne.s32.totalorder %s259_s1, %s134_s5  ;;  %p138_p9 = scmp.lt.u32.totalorder %s134_s5, %s259_s1 }
  0x16   :  { %p140_p10 = pnand %p138_p9, %p135_p8 }
  0x18   :  { %143 = shalt.err (!%p140_p10)
}
  0x19   :  { %s144_s10 = scalar_lea.vmem %s30_s18, 128  ;;  %p149_p12 = scmp.lt.s32.totalorder %s30_s18, %s30_s18 }
  0x1a   :  { %p145_p11 = scmp.ne.s32.totalorder %s30_s18, %s144_s10  ;;  %p150_p13 = scmp.lt.s32.totalorder %s144_s10, %s144_s10 }
  0x1c   :  { %p151_p0 = por %p150_p13, %p149_p12 }
  0x1e   :  { %p152_p1 = pnand %p151_p0, %p145_p11 }
  0x20   :  { %155 = shalt.err (!%p152_p1)
}
  0x21   :  { %32 = dma.hbm_to_vmem [thread:$0]  %s259_s1, 128, %s30_s18, [#allocation6]  }
  0x22   :  { %178 = dma.done.wait [#allocation3], 128  }
  0x23   :  { %179 = vsyncadd [#allocation3], 4294967168 }
  0x24   :  { %180 = dma.done.wait [#allocation6], 128  }
  0x25   :  { %181 = vsyncadd [#allocation6], 4294967168  ;;  %v39_v0 = vld [vmem:[#allocation2] sm:$0xff]  ;;  %vm42_vm0 = vcmask 261120   ;;  %v40_v1 = vld [vmem:[#allocation5] sm:$0xff]  ;;  %vm57_vm1 = vcmask 257024  }
  0x26   :  { %v41_v2 = vmul.f32 %v39_v0, %v39_v0  ;;  %v46_v3 = vmul.f32 %v40_v1, %v40_v1  ;;  %s186_s1 = smov [#allocation7]  }
  0x27   :  { %s83_s12 = sshll.u32 %s186_s1, 4  ;;  %s84_s12 = int_to_ptr.vmem [resolvable:$true] %s83_s12 }
  0x28   :  { %v43_v4 = vsel %vm42_vm0, %v41_v2, 0.0  ;;  %v47_v5 = vsel %vm42_vm0, %v46_v3, 0.0  ;;  %s156_s13 = scalar_lea.vmem %s84_s12, 64  ;;  %p161_p3 = scmp.lt.s32.totalorder %s84_s12, %s84_s12 }
  0x29   :  { %44 = vadd.xlane.f32.xlu0 %v43_v4  ;;  %p157_p2 = scmp.ne.s32.totalorder %s84_s12, %s156_s13  ;;  %p162_p4 = scmp.lt.s32.totalorder %s156_s13, %s156_s13 }
  0x2b   :  { %p163_p5 = por %p162_p4, %p161_p3 }
  0x2d   :  { %48 = vadd.xlane.f32.xlu0 %v47_v5  ;;  %p164_p6 = pnand %p163_p5, %p157_p2 }
  0xb6   :  { %v45_v6 = vpop.xlane.xlu0 %44 }
  0xb7   :  { %v50_v7 = vmax.f32 %v45_v6, 1e-16 }
  0xb9   :  { %104 = vrsqrt.f32 %v50_v7 }
  0xba   :  { %v49_v8 = vpop.xlane.xlu0 %48 }
  0xbb   :  { %v53_v9 = vmax.f32 %v49_v8, 1e-16 }
  0xbd   :  { %106 = vrsqrt.f32 %v53_v9 }
  0xc3   :  { %v105_v10 = vpop.eup %104 }
  0xc4   :  { %v52_v11 = vmul.f32 %v105_v10, %v39_v0 }
  0xc6   :  { %v56_v12 = vpack.c.bf16 %v52_v11, %v52_v11 }
  0xc7   :  { %v107_v13 = vpop.eup %106 }
  0xc8   :  { %v55_v14 = vmul.f32 %v107_v13, %v40_v1  ;;  %v68_v15 = vunpack.c.l.bf16 %v56_v12  ;;  %58 = vst.msk [vmem:[#allocation7] sm:$0xf] %vm57_vm1, %v56_v12 }
  0xca   :  { %v59_v16 = vmul.f32 %v55_v14, %v52_v11  ;;  %v69_v18 = vmul.f32 %v68_v15, %v68_v15 }
  0xcc   :  { %v60_v17 = vsel %vm42_vm0, %v59_v16, 0.0  ;;  %v70_v19 = vsel %vm42_vm0, %v69_v18, 0.0 }
  0xcd   :  { %61 = vadd.xlane.f32.xlu1 %v60_v17 }
  0xd1   :  { %71 = vadd.xlane.f32.xlu1 %v70_v19 }
  0xd2   :  { %167 = shalt.err (!%p164_p6)
}
  0xd3   :  { %s168_s16 = scalar_lea.hbm %s260_s2, 64 }
  0xd4   :  { %p169_p7 = scmp.ne.s32.totalorder %s260_s2, %s168_s16  ;;  %p172_p8 = scmp.lt.u32.totalorder %s168_s16, %s260_s2 }
  0xd6   :  { %p174_p9 = pnand %p172_p8, %p169_p7 }
  0xd8   :  { %177 = shalt.err (!%p174_p9)
}
  0xd9   :  { %86 = dma.vmem_to_hbm [thread:$0]  %s84_s12, 64, %s260_s2, [#allocation4]   ;;  %vm66_vm2 = vcmask 7168  }
 0x15a   :  { %v62_v20 = vpop.xlane.xlu1 %61 }
 0x15b   :  { %v63_v21 = vmul.f32 2.0, %v62_v20 }
 0x15d   :  { %v64_v22 = vmul.f32 1.442695, %v63_v21 }
 0x15e   :  { %v72_v23 = vpop.xlane.xlu1 %71 }
 0x15f   :  { %108 = vpow2.f32 %v64_v22  ;;  %v73_v24 = vmul.f32 2.0, %v72_v23 }
 0x161   :  { %v74_v25 = vmul.f32 1.442695, %v73_v24 }
 0x163   :  { %110 = vpow2.f32 %v74_v25 }
 0x169   :  { %v109_v26 = vpop.eup %108 }
 0x16a   :  { %67 = vst.msk [vmem:[%s261_s3] sm:$0xff] %vm66_vm2, %v109_v26 }
 0x16d   :  { %v111_v27 = vpop.eup %110 }
 0x16e   :  { %76 = vst.msk [vmem:[%s262_s4] sm:$0xff] %vm66_vm2, %v111_v27 }
 0x16f   :  { %182 = dma.done.wait [#allocation4], 64  }
 0x170   :  { %183 = vsyncadd [#allocation4], 4294967232 }
 0x171   :  { %98 = vsyncpa [#allocation3], 1 }
 0x172   :  { %99 = vsyncpa [#allocation6], 1 }
 0x173   :  { %100 = vsyncpa [#allocation4], 1 }

</bundles_post_ra>
